<compile_context>
chip_gen: v7x
topology: tpu7x:2x2x1
jax: 0.10.0
libtpu: 0.0.40
codegen_flags: <defaults>
</compile_context>

<pallas_src>
import functools

import numpy as np

import jax
import jax.numpy as jnp
from jax.experimental import pallas as pl
from jax.experimental.pallas import tpu as pltpu


# Matmul input dtype (accumulation is always f32).  float32 here gives
# bit-closer-to-PyTorch numerics at ~3x MXU cost.
_MXU_DTYPE = jnp.bfloat16

_BRANCH_ORDER = ("initialH3", "initialH4", "initialH5",
                 "finalH3", "finalH4", "finalH5", "finalR")


def _layer_specs(color_channel):
    # (cin, cout, kernel, padding, relu) — mirrors the PyTorch module.
    return {
        "initialH3": [(color_channel, 50, 3, 1, True), (50, 50, 3, 1, True),
                      (50, 50, 3, 1, True), (50, 50, 3, 1, True)],
        "initialH4": [(color_channel, 50, 4, 1, True), (50, 50, 4, 2, True),
                      (50, 50, 4, 1, True), (50, 50, 4, 2, True)],
        "initialH5": [(color_channel, 50, 5, 2, True), (50, 50, 5, 2, True),
                      (50, 50, 5, 2, True), (50, 50, 5, 2, True)],
        "finalH3":   [(150, 50, 3, 1, True)],
        "finalH4":   [(150, 50, 4, 1, True), (50, 50, 4, 2, True)],
        "finalH5":   [(150, 50, 5, 2, True)],
        "finalR":    [(150, 1, 1, 0, False)],
    }


# -----------------------------------------------------------------------------
# Static plan: per-layer metadata (valid-region tracking, tap/mask offsets).
# -----------------------------------------------------------------------------
def _build_plan(image_shape, color_channel):
    H, W = image_shape
    specs = _layer_specs(color_channel)
    plan = {}
    class_sizes = {}          # cin -> number of (cout, cin) tap matrices
    n_taps = 0
    layer_idx = 0
    max_cout = 0
    for name in _BRANCH_ORDER:
        h, w = H, W            # branch inputs (x / mid / mid2) are full-canvas valid
        entries = []
        for (cin, cout, k, pad, relu) in specs[name]:
            ho, wo = h + 2 * pad - k + 1, w + 2 * pad - k + 1
            assert 0 < ho <= H and 0 < wo <= W, "layer output exceeds canvas"
            entries.append(dict(
                cin=cin, cout=cout, k=k, pad=pad, relu=relu,
                h_in=h, w_in=w, h_out=ho, w_out=wo,
                layer_idx=layer_idx,
                tap_base=class_sizes.get(cin, 0),
                mask_base=n_taps))
            class_sizes[cin] = class_sizes.get(cin, 0) + k * k
            n_taps += k * k
            layer_idx += 1
            max_cout = max(max_cout, cout)
            h, w = ho, wo
        # Every branch must end at the full canvas (holds for these specs);
        # the channel concats and the output store rely on it.
        assert (h, w) == (H, W), f"branch {name} must end at full canvas"
        plan[name] = entries
    return plan, class_sizes, n_taps, max_cout


def _build_masks(plan, image_shape, n_taps):
    """Per-tap source-validity masks over the flat canvas (row-major y*W+x)."""
    H, W = image_shape
    yy, xx = np.meshgrid(np.arange(H), np.arange(W), indexing="ij")
    masks = np.zeros((n_taps, H * W), np.float32)
    for name in _BRANCH_ORDER:
        for e in plan[name]:
            k, pad = e["k"], e["pad"]
            allones = []
            for t in range(k * k):
                ky, kx = divmod(t, k)
                dy, dx = ky - pad, kx - pad
                valid = ((yy + dy >= 0) & (yy + dy < e["h_in"]) &
                         (xx + dx >= 0) & (xx + dx < e["w_in"]))
                masks[e["mask_base"] + t] = valid.reshape(-1)
                allones.append(bool(valid.all()))
            e["allones"] = allones
    return masks


# -----------------------------------------------------------------------------
# pltpu.roll direction probe: guarantees the tap-shift sign is correct under
# either rotation convention (one-off, cached).
# -----------------------------------------------------------------------------
@functools.lru_cache(maxsize=None)
def _roll_shift_sign():
    def probe(x_ref, o_ref):
        o_ref[...] = pltpu.roll(x_ref[...], 1, 1)

    x = jnp.broadcast_to(jnp.arange(128, dtype=jnp.int32), (8, 128))
    y = pl.pallas_call(
        probe, out_shape=jax.ShapeDtypeStruct((8, 128), jnp.int32))(x)
    jnp_like = int(y[0, 0]) == 127   # jnp.roll convention: out[i] = x[i - shift]
    # We need rolled[j] == a[j + d]; under the jnp convention that's shift = -d.
    return -1 if jnp_like else 1


# -----------------------------------------------------------------------------
# The fused kernel (one grid step = one group of Bg images folded into lanes).
# -----------------------------------------------------------------------------
def _reveal_kernel(*refs, plan, class_keys, canvas, L, shift_sign):
    H, W = canvas
    ncls = len(class_keys)
    x_ref = refs[0]
    w_refs = {c: refs[1 + i] for i, c in enumerate(class_keys)}
    b_ref = refs[1 + ncls]       # (max_cout, n_layers) f32
    m_ref = refs[2 + ncls]       # (n_taps, L) mask, _MXU_DTYPE
    o_ref = refs[3 + ncls]       # (1, 1, L) f32

    def conv(a, e):
        """Conv2d + bias (+ReLU).  a: (cin, L) _MXU_DTYPE canvas -> (cout, L) f32."""
        cin, cout, k, pad = e["cin"], e["cout"], e["k"], e["pad"]
        wr = w_refs[cin]
        acc = None
        for t in range(k * k):
            ky, kx = divmod(t, k)
            d = (ky - pad) * W + (kx - pad)              # flat source offset (static)
            src = a if d == 0 else pltpu.roll(a, (shift_sign * d) % L, 1)
            if not e["allones"][t]:
                # zero contributions whose source pixel is padding / out of the
                # valid region / wrapped across an image boundary by the roll
                src = src * m_ref[e["mask_base"] + t: e["mask_base"] + t + 1, :]
            w_tap = wr[e["tap_base"] + t][:cout, :]      # (cout, cin)
            part = jnp.dot(w_tap, src, preferred_element_type=jnp.float32)
            acc = part if acc is None else acc + part
        out = acc + b_ref[0:cout, e["layer_idx"]: e["layer_idx"] + 1]
        if e["relu"]:
            out = jnp.maximum(out, 0.0)
        return out

    def run_branch(a, name, last_f32=False):
        entries = plan[name]
        for i, e in enumerate(entries):
            out = conv(a, e)
            last = i == len(entries) - 1
            a = out if (last and last_f32) else out.astype(_MXU_DTYPE)  # cast once/layer
        return a

    x_bf = x_ref[0].astype(_MXU_DTYPE)                   # (C, L), cast once
    h1 = run_branch(x_bf, "initialH3")
    h2 = run_branch(x_bf, "initialH4")
    h3 = run_branch(x_bf, "initialH5")
    mid = jnp.concatenate([h1, h2, h3], axis=0)          # == torch.cat(dim=1)
    h4 = run_branch(mid, "finalH3")
    h5 = run_branch(mid, "finalH4")
    h6 = run_branch(mid, "finalH5")
    mid2 = jnp.concatenate([h4, h5, h6], axis=0)
    secret = run_branch(mid2, "finalR", last_f32=True)   # (1, L) f32
    o_ref[...] = secret.reshape(o_ref.shape)


# -----------------------------------------------------------------------------
# Parameters (PyTorch-default-like init, torch weight layout) + packing into
# the kernel layout: per-Cin-class tap arrays, one bias matrix, one mask set.
# -----------------------------------------------------------------------------
def _init_conv_torch(key, cin, cout, k):
    kw, kb = jax.random.split(key)
    fan_in = cin * k * k
    bound = 1.0 / (fan_in ** 0.5)
    w = jax.random.uniform(kw, (cout, cin, k, k), jnp.float32, -bound, bound)
    b = jax.random.uniform(kb, (cout,), jnp.float32, -bound, bound)
    return w, b


def make_params(key, color_channel=3):
    specs = _layer_specs(color_channel)
    params = {}
    for name in _BRANCH_ORDER:
        layers = []
        for (cin, cout, k, _pad, _relu) in specs[name]:
            key, sub = jax.random.split(key)
            layers.append(_init_conv_torch(sub, cin, cout, k))
        params[name] = layers
    return params


def pack_params(params, image_shape=(16, 16), color_channel=3):
    plan, class_sizes, n_taps, max_cout = _build_plan(image_shape, color_channel)
    masks = _build_masks(plan, image_shape, n_taps)      # fills e["allones"]
    class_keys = sorted(class_sizes)
    n_layers = sum(len(plan[n]) for n in _BRANCH_ORDER)

    w_cls = {c: np.zeros((class_sizes[c], max_cout, c), np.float32)
             for c in class_keys}
    bias = np.zeros((max_cout, n_layers), np.float32)

    for name in _BRANCH_ORDER:
        for e, (w, b) in zip(plan[name], params[name]):
            cout, cin, k = e["cout"], e["cin"], e["k"]
            w_np = np.asarray(w, dtype=np.float32)       # (cout, cin, k, k)
            taps = np.transpose(w_np, (2, 3, 0, 1)).reshape(k * k, cout, cin)
            w_cls[cin][e["tap_base"]: e["tap_base"] + k * k, :cout, :] = taps
            bias[:cout, e["layer_idx"]] = np.asarray(b, dtype=np.float32)

    return dict(
        plan=plan,
        class_keys=class_keys,
        image_shape=tuple(image_shape),
        color_channel=color_channel,
        n_taps=n_taps,
        w_class={c: jnp.asarray(w_cls[c], _MXU_DTYPE) for c in class_keys},
        bias=jnp.asarray(bias, jnp.float32),
        masks=masks,                                     # numpy (n_taps, H*W) f32
    )


# -----------------------------------------------------------------------------
# Forward pass: single fused pallas_call; batch folded into lanes per grid step.
# -----------------------------------------------------------------------------
def reveal_network_forward(packed, secret_in_cover_nchw, *, grid_groups=None):
    x = secret_in_cover_nchw.astype(jnp.float32)
    N, C, H, W = x.shape
    assert (H, W) == packed["image_shape"], "params packed for another image shape"
    assert C == packed["color_channel"]

    # grid_groups=2 keeps both v7x TensorCores busy; use 1 on v5e/v6e to fold
    # the whole batch into one lane-wide step.
    G = min(2, N) if grid_groups is None else grid_groups
    assert N % G == 0, "batch must divide evenly into grid groups"
    Bg = N // G
    L = Bg * H * W

    x_flat = x.reshape(G, Bg, C, H * W).transpose(0, 2, 1, 3).reshape(G, C, L)
    masks = jnp.asarray(np.tile(packed["masks"], (1, Bg)), _MXU_DTYPE)

    class_keys = packed["class_keys"]
    inputs = ([x_flat]
              + [packed["w_class"][c] for c in class_keys]
              + [packed["bias"], masks])

    in_specs = [pl.BlockSpec((1, C, L), lambda g: (g, 0, 0))]
    for c in class_keys:
        shp = packed["w_class"][c].shape
        in_specs.append(pl.BlockSpec(shp, lambda g: (0, 0, 0)))
    in_specs.append(pl.BlockSpec(packed["bias"].shape, lambda g: (0, 0)))
    in_specs.append(pl.BlockSpec(masks.shape, lambda g: (0, 0)))

    kernel = functools.partial(
        _reveal_kernel,
        plan=packed["plan"], class_keys=class_keys,
        canvas=(H, W), L=L, shift_sign=_roll_shift_sign())

    out_flat = pl.pallas_call(
        kernel,
        out_shape=jax.ShapeDtypeStruct((G, 1, L), jnp.float32),
        grid_spec=pltpu.PrefetchScalarGridSpec(
            num_scalar_prefetch=0,
            grid=(G,),
            in_specs=in_specs,
            out_specs=pl.BlockSpec((1, 1, L), lambda g: (g, 0, 0)),
        ),
        compiler_params=pltpu.CompilerParams(
            dimension_semantics=("parallel",)),
    )(*inputs)

    return (out_flat.reshape(G, 1, Bg, H * W)
            .transpose(0, 2, 1, 3)
            .reshape(N, 1, H, W))


# -----------------------------------------------------------------------------
if __name__ == "__main__":
    key = jax.random.PRNGKey(0)
    k_params, k_input = jax.random.split(key)

    N, C, H, W = 2, 3, 16, 16                            # color_channel=3, 16x16 image
    params = make_params(k_params, color_channel=C)
    packed = pack_params(params, image_shape=(H, W), color_channel=C)
    x = jax.random.normal(k_input, (N, C, H, W), jnp.float32)

    out = reveal_network_forward(packed, x)
    out = jax.block_until_ready(out)

    assert out.shape == (N, 1, H, W), out.shape
    assert bool(jnp.all(jnp.isfinite(out)))
    print("KERNEL_OK")
</pallas_src>

<mosaic_0001>
module attributes {stable_mosaic.version = 11 : i64} {
  func.func @probe(%arg0: memref<8x128xi32, #tpu.memory_space<vmem>>, %arg1: memref<8x128xi32, #tpu.memory_space<vmem>>) attributes {dimension_semantics = [], scalar_prefetch = 0 : i64, scratch_operands = 0 : i64, tpu.core_type = #tpu.core_type<tc>} {
    %c0 = arith.constant 0 : index
    %c0_0 = arith.constant 0 : index
    %0 = vector.load %arg0[%c0, %c0_0] : memref<8x128xi32, #tpu.memory_space<vmem>>, vector<8x128xi32>
    %c1_i32 = arith.constant 1 : i32
    %1 = tpu.dynamic_rotate %0 by %c1_i32 dim 1 : vector<8x128xi32>, i32 -> vector<8x128xi32>
    %c0_1 = arith.constant 0 : index
    %c0_2 = arith.constant 0 : index
    %2 = vector.load %arg1[%c0_1, %c0_2] : memref<8x128xi32, #tpu.memory_space<vmem>>, vector<8x128xi32>
    tpu.vector_store %arg1[%c0_1, %c0_2], %1 {strides = array<i32>} : memref<8x128xi32, #tpu.memory_space<vmem>>, vector<8x128xi32>,
    return
  }
}

</mosaic_0001>

<bundles_post_ra>
// kernel: tpu_custom_call.1
= control target key start
LH: loop header
LB: loop body
LE: loop exit
PB: predicated region body
PF: predicated region fallthrough
CT: control target
= control target key end

     0   :  { %6 = vsyncpa [#allocation3], 0  ;;  %s128_s0 = inlined_call_operand.hbm [shape: s32[8,128], index: 0, kind: input, shape index: {}]   ;;  %s129_s1 = inlined_call_operand.hbm [shape: s32[8,128], index: 1, kind: output, shape index: {}]  }
   0x1   :  { %7 = vsyncpa [#allocation4], 0  ;;  %s91_s6 = smov [#allocation2]   ;;  %s43_s10 = scalar_lea.hbm %s128_s0, 128 }
   0x2   :  { %s14_s7 = sshll.u32 %s91_s6, 4  ;;  %p44_p0 = scmp.ne.s32.totalorder %s128_s0, %s43_s10  ;;  %s15_s7 = int_to_ptr.vmem [resolvable:$true] %s14_s7 }
   0x3   :  { %p47_p1 = scmp.lt.u32.totalorder %s43_s10, %s128_s0 }
   0x5   :  { %p49_p2 = pnand %p47_p1, %p44_p0 }
   0x7   :  { %52 = shalt.err (!%p49_p2)
}
   0x8   :  { %s53_s15 = scalar_lea.vmem %s15_s7, 128  ;;  %p58_p4 = scmp.lt.s32.totalorder %s15_s7, %s15_s7 }
   0x9   :  { %p54_p3 = scmp.ne.s32.totalorder %s15_s7, %s53_s15  ;;  %p59_p5 = scmp.lt.s32.totalorder %s53_s15, %s53_s15 }
   0xb   :  { %p60_p6 = por %p59_p5, %p58_p4 }
   0xd   :  { %p61_p7 = pnand %p60_p6, %p54_p3 }
   0xf   :  { %64 = shalt.err (!%p61_p7)
}
  0x10   :  { %17 = dma.hbm_to_vmem [thread:$0]  %s128_s0, 128, %s15_s7, [#allocation3]  }
  0x11   :  { %87 = dma.done.wait [#allocation3], 128  }
  0x12   :  { %88 = vsyncadd [#allocation3], 4294967168  ;;  %v21_v0 = vld [vmem:[#allocation2] sm:$0xff]  ;;  %s92_s18 = smov 1   ;;  %s93_s19 = smov [#allocation5]  }
  0x13   :  { %22 = vrot.lane.b32.xlu0 %v21_v0, %s92_s18  ;;  %s31_s20 = sshll.u32 %s93_s19, 4  ;;  %s32_s20 = int_to_ptr.vmem [resolvable:$true] %s31_s20 }
  0x14   :  { %s65_s21 = scalar_lea.vmem %s32_s20, 128  ;;  %p70_p9 = scmp.lt.s32.totalorder %s32_s20, %s32_s20 }
  0x15   :  { %p66_p8 = scmp.ne.s32.totalorder %s32_s20, %s65_s21  ;;  %p71_p10 = scmp.lt.s32.totalorder %s65_s21, %s65_s21 }
  0x17   :  { %p72_p11 = por %p71_p10, %p70_p9 }
  0x19   :  { %p73_p12 = pnand %p72_p11, %p66_p8 }
  0x85   :  { %v23_v1 = vpop.permute.xlu0 %22 }
  0x86   :  { %24 = vst [vmem:[#allocation5] sm:$0xff] %v23_v1 }
  0x87   :  { %76 = shalt.err (!%p73_p12)
}
  0x88   :  { %s77_s0 = scalar_lea.hbm %s129_s1, 128 }
  0x89   :  { %p78_p13 = scmp.ne.s32.totalorder %s129_s1, %s77_s0  ;;  %p81_p0 = scmp.lt.u32.totalorder %s77_s0, %s129_s1 }
  0x8b   :  { %p83_p1 = pnand %p81_p0, %p78_p13 }
  0x8d   :  { %86 = shalt.err (!%p83_p1)
}
  0x8e   :  { %34 = dma.vmem_to_hbm [thread:$0]  %s32_s20, 128, %s129_s1, [#allocation4]  }
  0x8f   :  { %89 = dma.done.wait [#allocation4], 128  }
  0x90   :  { %90 = vsyncadd [#allocation4], 4294967168 }
  0x91   :  { %38 = vsyncpa [#allocation3], 1 }
  0x92   :  { %39 = vsyncpa [#allocation4], 1 }

</bundles_post_ra>
